<compile_context>
chip_gen: v7x
topology: tpu7x:2x2x1
jax: 0.10.0
libtpu: 0.0.40
codegen_flags: <defaults>
</compile_context>

<pallas_src>
import functools

import jax
import jax.numpy as jnp
from jax import lax
from jax.experimental import pallas as pl
from jax.experimental.pallas import tpu as pltpu

EPSILON = 1e-08
LANES = 128
SUB_ROWS = 512          # in-kernel sub-chunk (512*128*4B = 256 KiB f32 temporaries)


def _round_up(x, m):
    return ((x + m - 1) // m) * m


def _focal_loss_kernel(out_ref, tgt_ref, partial_ref, *, gamma, alpha, ignore_index,
                       num_ch, ch_elems, valid_rows, tile_rows, sub_rows,
                       assume_binary_target):
    n_sub = tile_rows // sub_rows
    tile_row0 = pl.program_id(0) * tile_rows
    mask_ignore = ignore_index is not None and 0 <= ignore_index < num_ch
    hw_row_aligned = (ch_elems % LANES) == 0

    def chunk_sum(r0):
        # (sub_rows, 128) lane-dense sub-chunk; cast to f32 in-kernel so narrow HBM dtypes
        # (bf16 probabilities, uint8/bool targets) stay narrow across the DMA.
        os_ = jnp.clip(out_ref[pl.ds(r0, sub_rows), :].astype(jnp.float32),
                       EPSILON, 1.0 - EPSILON)
        ts = tgt_ref[pl.ds(r0, sub_rows), :].astype(jnp.float32)
        logpt = ts * jnp.log(os_)
        if assume_binary_target:
            # exact for ts in {0,1}: pt == os when ts == 1, and val == 0 anyway when ts == 0
            one_minus_pt = 1.0 - os_
        else:
            one_minus_pt = 1.0 - jnp.exp(logpt)       # general soft-target form
        if alpha is not None:
            logpt = logpt * alpha
        focal = jnp.square(one_minus_pt) if gamma == 2 else one_minus_pt ** gamma
        val = -focal * logpt

        # Row-wise validity mask: rows past `valid_rows` only exist in the (partial) last block
        # and their buffer contents are undefined -> mask `val` (also kills NaN garbage).
        row_ids = tile_row0 + r0 + lax.broadcasted_iota(jnp.int32, (sub_rows, 1), 0)
        keep = row_ids < valid_rows                   # (sub_rows, 1)
        if mask_ignore:
            if hw_row_aligned:
                # every 128-lane row lies inside one channel -> cheap (sub_rows,1) mask
                rows_per_ch = ch_elems // LANES
                channel = (row_ids // rows_per_ch) % num_ch
                keep = jnp.logical_and(keep, channel != ignore_index)
            else:
                # TODO(synk): int32 flat-index math overflows for numel >= 2**31 elements.
                cols = lax.broadcasted_iota(jnp.int32, (sub_rows, LANES), 1)
                channel = ((row_ids * LANES + cols) // ch_elems) % num_ch
                keep = jnp.logical_and(keep, channel != ignore_index)
        val = jnp.where(keep, val, 0.0)

        # sublane-only partial reduction down to a single vreg (8, 128)
        return jnp.sum(val.reshape(sub_rows // 8, 8, LANES), axis=0)

    if n_sub == 1:
        acc = chunk_sum(0)
    else:
        acc = lax.fori_loop(
            0, n_sub,
            lambda c, a: a + chunk_sum(pl.multiple_of(c * sub_rows, sub_rows)),
            jnp.zeros((8, LANES), jnp.float32),
            unroll=min(8, n_sub))
    partial_ref[...] = acc


def focal_loss(output, target, *, gamma=2, alpha=None, ignore_index=None,
               reduction="mean", assume_binary_target=True, block_rows=4096):
    assert output.shape == target.shape
    B, C, H, W = output.shape
    HW = H * W
    N = B * C * HW

    # Flat element view of the contiguous NCHW buffer -- no transpose, no dtype promotion.
    out_flat = output.reshape(-1)
    tgt_flat = target.reshape(-1)

    rem = N % LANES
    if rem:
        # TODO(synk): rare case (numel not a multiple of 128) still pays one jnp.pad HBM copy;
        # the <=127 padded elements (output=0 -> clipped, target=0) contribute exactly 0.
        pad = LANES - rem
        out_flat = jnp.pad(out_flat, (0, pad))
        tgt_flat = jnp.pad(tgt_flat, (0, pad))

    rows = (N + LANES - 1) // LANES

    # Tile selection: big blocks amortize the ~0.35us/grid-step overhead, but keep >=2 tiles
    # whenever possible so v7x's two TensorCores both get work; multiple of SUB_ROWS so the
    # in-kernel sub-chunk loop tiles it exactly.
    tile_rows = max(8, min(block_rows, _round_up(pl.cdiv(rows, 2), 8)))
    if tile_rows > SUB_ROWS:
        tile_rows = _round_up(tile_rows, SUB_ROWS)
    sub_rows = min(SUB_ROWS, tile_rows)
    assert tile_rows % sub_rows == 0
    num_tiles = pl.cdiv(rows, tile_rows)

    out2d = out_flat.reshape(rows, LANES)   # bf16 / uint8 stay narrow across the DMA
    tgt2d = tgt_flat.reshape(rows, LANES)

    # VMEM budget: 2 inputs x 2 pipeline buffers x block, plus headroom for bounded sub-chunk
    # temporaries; floor at 32 MiB (v5e scoped default is only 16 MiB).
    in_block_bytes = tile_rows * LANES * (out2d.dtype.itemsize + tgt2d.dtype.itemsize)
    vmem_limit = min(96 * 1024 * 1024,
                     max(32 * 1024 * 1024, 2 * in_block_bytes + 8 * 1024 * 1024))

    kernel = functools.partial(
        _focal_loss_kernel, gamma=gamma, alpha=alpha, ignore_index=ignore_index,
        num_ch=C, ch_elems=HW, valid_rows=rows, tile_rows=tile_rows, sub_rows=sub_rows,
        assume_binary_target=assume_binary_target)

    partials = pl.pallas_call(
        kernel,
        out_shape=jax.ShapeDtypeStruct((num_tiles * 8, LANES), jnp.float32),
        grid_spec=pltpu.PrefetchScalarGridSpec(
            num_scalar_prefetch=0,
            grid=(num_tiles,),
            in_specs=[
                pl.BlockSpec((tile_rows, LANES), lambda i: (i, 0)),
                pl.BlockSpec((tile_rows, LANES), lambda i: (i, 0)),
            ],
            out_specs=pl.BlockSpec((8, LANES), lambda i: (i, 0)),
        ),
        compiler_params=pltpu.CompilerParams(
            dimension_semantics=("parallel",),      # lets v7x shard tiles over both TCs
            vmem_limit_bytes=vmem_limit,
        ),
    )(out2d, tgt2d)

    total = jnp.sum(partials)                        # tiny final reduction in the wrapper

    skipped = 1 if (ignore_index is not None and 0 <= ignore_index < C) else 0
    n_count = C - skipped
    loss = total / jnp.float32(B * HW)               # == sum over channels of per-channel mean
    if reduction == "mean":
        loss = loss / jnp.float32(n_count)
    # TODO(synk): reductions other than 'mean' return the channel-sum, matching the original
    # module (it only special-cases 'mean').
    return loss


def _focal_loss_ref(output, target, *, gamma=2, alpha=None, ignore_index=None,
                    reduction="mean"):
    # pure-JAX reference mirroring the PyTorch loop
    B, C, H, W = output.shape
    loss = 0.0
    n_count = 0
    for i in range(C):
        if ignore_index is not None and i == ignore_index:
            continue
        os_ = jnp.clip(output[:, i].reshape(B, -1).astype(jnp.float32),
                       EPSILON, 1.0 - EPSILON)
        ts = target[:, i].reshape(B, -1).astype(jnp.float32)
        logpt_pos = ts * jnp.log(os_)
        pt_pos = jnp.exp(logpt_pos)
        if alpha:
            logpt_pos = logpt_pos * alpha
        val = -((1 - pt_pos) ** gamma) * logpt_pos
        loss += val.mean()
        n_count += 1
    if reduction == "mean":
        loss /= n_count
    return loss


if __name__ == "__main__":
    key = jax.random.PRNGKey(0)
    k1, k2 = jax.random.split(key)
    B, C, H, W = 2, 4, 16, 16

    # output: probabilities in (0, 1); target: binary mask — same shapes the PyTorch forward expects
    output = jax.nn.sigmoid(jax.random.normal(k1, (B, C, H, W), dtype=jnp.float32))
    target = (jax.random.uniform(k2, (B, C, H, W)) > 0.5).astype(jnp.float32)

    loss = focal_loss(output, target, gamma=2, alpha=None,
                      ignore_index=None, reduction="mean")
    loss = jax.block_until_ready(loss)
    ref = _focal_loss_ref(output, target, gamma=2, alpha=None, reduction="mean")
    assert jnp.allclose(loss, ref, atol=1e-5, rtol=1e-5), (loss, ref)

    # ignore_index path (row-wise in-kernel channel mask, no host-side gather)
    loss_ig = focal_loss(output, target, gamma=2, alpha=None,
                         ignore_index=2, reduction="mean")
    loss_ig = jax.block_until_ready(loss_ig)
    ref_ig = _focal_loss_ref(output, target, gamma=2, alpha=None,
                             ignore_index=2, reduction="mean")
    assert jnp.allclose(loss_ig, ref_ig, atol=1e-5, rtol=1e-5), (loss_ig, ref_ig)

    # partial last block (rows % tile_rows != 0) exercises the in-kernel tail mask (no jnp.pad)
    B2, C2 = 2, 3
    out2 = jax.nn.sigmoid(jax.random.normal(k1, (B2, C2, H, W), dtype=jnp.float32))
    tgt2 = (jax.random.uniform(k2, (B2, C2, H, W)) > 0.5).astype(jnp.float32)
    loss_t = focal_loss(out2, tgt2)
    loss_t = jax.block_until_ready(loss_t)
    ref_t = _focal_loss_ref(out2, tgt2)
    assert jnp.allclose(loss_t, ref_t, atol=1e-5, rtol=1e-5), (loss_t, ref_t)

    print("KERNEL_OK")
</pallas_src>

<mosaic_0001>
module attributes {stable_mosaic.version = 11 : i64} {
  func.func @_focal_loss_kernel(%arg0: i32, %arg1: memref<8x128xf32, #tpu.memory_space<vmem>>, %arg2: memref<8x128xf32, #tpu.memory_space<vmem>>, %arg3: memref<8x128xf32, #tpu.memory_space<vmem>>) attributes {dimension_semantics = [#tpu.dimension_semantics<parallel>], iteration_bounds = array<i64: 2>, scalar_prefetch = 0 : i64, scratch_operands = 0 : i64, tpu.core_type = #tpu.core_type<tc>, window_params = [{transform_indices = @transform_0, window_bounds = array<i64: 8, 128>}, {transform_indices = @transform_1, window_bounds = array<i64: 8, 128>}, {transform_indices = @transform_2, window_bounds = array<i64: 8, 128>}]} {
    %c8_i32 = arith.constant 8 : i32
    %0 = arith.muli %arg0, %c8_i32 : i32
    %c0 = arith.constant 0 : index
    %c0_0 = arith.constant 0 : index
    %1 = vector.load %arg1[%c0, %c0_0] : memref<8x128xf32, #tpu.memory_space<vmem>>, vector<8x128xf32>
    %cst = arith.constant 9.99999993E-9 : f32
    %cst_1 = arith.constant 1.000000e+00 : f32
    %2 = vector.broadcast %cst : f32 to vector<8x128xf32>
    %3 = arith.maximumf %2, %1 : vector<8x128xf32>
    %4 = vector.broadcast %cst_1 : f32 to vector<8x128xf32>
    %5 = arith.minimumf %4, %3 : vector<8x128xf32>
    %c0_2 = arith.constant 0 : index
    %c0_3 = arith.constant 0 : index
    %6 = vector.load %arg2[%c0_2, %c0_3] : memref<8x128xf32, #tpu.memory_space<vmem>>, vector<8x128xf32>
    %7 = math.log %5 : vector<8x128xf32>
    %8 = arith.mulf %6, %7 : vector<8x128xf32>
    %cst_4 = arith.constant 1.000000e+00 : f32
    %9 = vector.broadcast %cst_4 : f32 to vector<8x128xf32>
    %10 = arith.subf %9, %5 : vector<8x128xf32>
    %11 = arith.mulf %10, %10 : vector<8x128xf32>
    %cst_5 = arith.constant 0.000000e+00 : f32
    %12 = vector.broadcast %cst_5 : f32 to vector<8x128xf32>
    %13 = arith.subf %12, %11 : vector<8x128xf32>
    %14 = arith.mulf %13, %8 : vector<8x128xf32>
    %c0_i32 = arith.constant 0 : i32
    %15 = arith.addi %0, %c0_i32 : i32
    %16 = tpu.iota {dimensions = array<i32: 0>} : vector<8x1xi32>
    %17 = vector.broadcast %15 : i32 to vector<8x1xi32>
    %18 = arith.addi %17, %16 : vector<8x1xi32>
    %c16_i32 = arith.constant 16 : i32
    %19 = vector.broadcast %c16_i32 : i32 to vector<8x1xi32>
    %20 = arith.cmpi slt, %18, %19 : vector<8x1xi32>
    %cst_6 = arith.constant 0.000000e+00 : f32
    %21 = vector.shape_cast %20 : vector<8x1xi1> to vector<8x1xi1>
    %22 = vector.broadcast %21 : vector<8x1xi1> to vector<8x128xi1>
    %23 = vector.broadcast %cst_6 : f32 to vector<8x128xf32>
    %24 = arith.select %22, %14, %23 : vector<8x128xi1>, vector<8x128xf32>
    %25 = vector.shape_cast %24 : vector<8x128xf32> to vector<1x8x128xf32>
    %cst_7 = arith.constant dense<0.000000e+00> : vector<8x128xf32>
    %26 = vector.multi_reduction <add>, %25, %cst_7 [0] : vector<1x8x128xf32> to vector<8x128xf32>
    %c0_8 = arith.constant 0 : index
    %c0_9 = arith.constant 0 : index
    %27 = vector.load %arg3[%c0_8, %c0_9] : memref<8x128xf32, #tpu.memory_space<vmem>>, vector<8x128xf32>
    tpu.vector_store %arg3[%c0_8, %c0_9], %26 {strides = array<i32>} : memref<8x128xf32, #tpu.memory_space<vmem>>, vector<8x128xf32>,
    return
  }
  func.func @transform_0(%arg0: i32) -> (i32, i32) {
    %c0_i32 = arith.constant 0 : i32
    %c0_i32_0 = arith.constant 0 : i32
    return %arg0, %c0_i32 : i32, i32
  }
  func.func @transform_1(%arg0: i32) -> (i32, i32) {
    %c0_i32 = arith.constant 0 : i32
    %c0_i32_0 = arith.constant 0 : i32
    return %arg0, %c0_i32 : i32, i32
  }
  func.func @transform_2(%arg0: i32) -> (i32, i32) {
    %c0_i32 = arith.constant 0 : i32
    %c0_i32_0 = arith.constant 0 : i32
    return %arg0, %c0_i32 : i32, i32
  }
}

</mosaic_0001>

<bundles_post_ra>
// kernel: tpu_custom_call.1
= control target key start
LH: loop header
LB: loop body
LE: loop exit
PB: predicated region body
PF: predicated region fallthrough
CT: control target
= control target key end

     0   :  { %7 = vsyncpa [#allocation3], 0  ;;  %s759_s0 = inlined_call_operand.hbm [shape: f32[16,128], index: 0, kind: input, shape index: {}]   ;;  %s760_s1 = inlined_call_operand.hbm [shape: f32[16,128], index: 1, kind: input, shape index: {}]   ;;  %s761_s2 = inlined_call_operand.hbm [shape: f32[16,128], index: 2, kind: output, shape index: {}]  }
   0x1   :  { %9 = vsyncpa [#allocation3 + $0x1], 0 }
   0x2   :  { %10 = vsyncpa [#allocation6], 0 }
   0x3   :  { %12 = vsyncpa [#allocation6 + $0x1], 0 }
   0x4   :  { %13 = vsyncpa [#allocation4], 0 }
   0x5   :  { %15 = vsyncpa [#allocation4 + $0x1], 0  ;;  %s544_s9 = smov 0   ;;  %s546_s10 = smov 0  }
   0x6   :  { %s548_s11 = smov 0   ;;  %s550_s12 = smov 0  }
   0x7 LB: > { %s565_s13 = sadd.s32 4294967295, %s524_s12   ;;  %s325_s14 = sadd.s32 4294967294, %s524_s12   ;;  %s524_s12 = sphi %s550_s12, %s780_s12   ;;  %s520_s11 = sphi %s548_s11, %s779_s11   ;;  %s516_s10 = sphi %s546_s10, %s778_s10   ;;  %s512_s9 = sphi %s544_s9, %s777_s9  }
   0x8   : > { %s569_s15 = sadd.s32 1, %s524_s12   ;;  %s28_s16 = sadd.s32 1, %s520_s11 }
   0x9   : > { %s25_s17 = ssub.s32 %s524_s12, %s569_s15  ;;  %p35_p0 = scmp.ne.s32.totalorder %s520_s11, %s516_s10 }
   0xa   : > { %p26_p1 = scmp.eq.s32.totalorder %s25_s17, 0  ;;  %p36_p2 = scmp.eq.s32.totalorder %s524_s12, 0 }
   0xb   : > { %p41_p3 = scmp.ne.s32.totalorder %s516_s10, %s512_s9  ;;  %p42_p4 = scmp.eq.s32.totalorder %s565_s13, 0 }
   0xc   : > { %s581_s18 = scalar_select %p26_p1, %s520_s11, %s28_s16  }
   0xd   : > { %p583_p5 = por %p36_p2, %p35_p0  ;;  %p587_p6 = por %p42_p4, %p41_p3 }
   0xe   : > { %p91_p7 = scmp.eq.s32.totalorder %s565_s13, 1  ;;  %p97_p8 = scmp.eq.s32.totalorder %s325_s14, 1 }
   0xf   : > { %s765_s20 = scalar_select %p587_p6, 1, 0 }
  0x10   : > { %p358_p10 = scmp.lt.s32.totalorder %s524_s12, 2  ;;  %p594_p11 = por %p91_p7, %p35_p0 }
  0x11   : > { %p598_p12 = por %p97_p8, %p41_p3  ;;  %s603_s23 = sand.u32 1, %s520_s11  }
  0x12   : > { %s766_s21 = scalar_select %p594_p11, 1, 0 }
  0x13   : > { %s767_s22 = scalar_select %p598_p12, 1, 0 }
  0x14   : > { %s329_s24 = sshll.u32 %s524_s12, 7  ;;  %s328_s25 = sshll.u32 %s603_s23, 3 }
  0x15   : > { %s612_s28 = scalar_lea.hbm %s759_s0, %s329_s24  ;;  %s121_s29 = scalar_lea.vmem [#allocation2], %s328_s25 }
  0x16   : > { %s128_s30 = sshll.u32 %s121_s29, 4  ;;  %p618_p13 = pnand %p358_p10, %p583_p5  ;;  %s622_s30 = int_to_ptr.vmem [resolvable:$true] %s128_s30 }
  0x17   : > { %s118_s4 = scalar_lea.sflag [#allocation3], %s603_s23  ;;  %s394_s5 = scalar_lea.hbm %s612_s28, 128 }
  0x18   : > { %p395_p2 = scmp.ne.s32.totalorder %s612_s28, %s394_s5  ;;  %p396_p3 = pneg %p618_p13 }
  0x19   : > { %s399_s8 = scalar_lea.hbm %s759_s0, 256  ;;  %p400_p5 = scmp.lt.u32.totalorder %s612_s28, %s759_s0 }
  0x1a   : > { %p397_p4 = pnand %p396_p3, %p395_p2  ;;  %p401_p8 = scmp.lt.u32.totalorder %s399_s8, %s394_s5 }
  0x1b   : > { %p403_p9 = scmp.lt.u32.totalorder %s394_s5, %s612_s28 }
  0x1c   : > { %p398_p7 = pneg %p397_p4  ;;  %p402_p10 = por %p401_p8, %p400_p5 }
  0x1e   : > { %p404_p0 = por %p403_p9, %p402_p10 }
  0x20   : > { %p405_p1 = pnand %p404_p0, %p398_p7 }
  0x22   : > { %408 = shalt.err (!%p405_p1)
}
  0x23   : > { %s409_s17 = scalar_lea.vmem %s622_s30, 128  ;;  %s526_s19 = smov [#allocation2]  }
  0x24   : > { %p410_p2 = scmp.ne.s32.totalorder %s622_s30, %s409_s17  ;;  %s414_s26 = sshll.u32 %s526_s19, 4  ;;  %s415_s26 = int_to_ptr.vmem [resolvable:$false] %s414_s26 }
  0x25   : > { %s416_s27 = scalar_lea.vmem %s415_s26, 256  ;;  %p417_p11 = scmp.lt.s32.totalorder %s622_s30, %s415_s26 }
  0x26   : > { %p412_p4 = pnand %p410_p2, %p396_p3  ;;  %p418_p5 = scmp.lt.s32.totalorder %s416_s27, %s409_s17 }
  0x28   : > { %p413_p12 = pneg %p412_p4  ;;  %p419_p8 = por %p418_p5, %p417_p11 }
  0x2a   : > { %p420_p9 = pnand %p419_p8, %p413_p12 }
  0x2c   : > { %423 = shalt.err (!%p420_p9)
}
  0x2d   : > { %350 = dma.hbm_to_vmem [thread:$0]  (!%p618_p13), %s612_s28, 128, %s622_s30, %s118_s4  }
  0x2e   : > { %p769_p0 = scmp.lt.s32.totalorder %s524_s12, 3  ;;  %p770_p1 = scmp.ge.s32.totalorder %s524_s12, 1 }
  0x2f   : > { %s665_s7 = scalar_lea.hbm %s760_s1, %s329_s24  ;;  %s139_s8 = scalar_lea.vmem [#allocation5], %s328_s25 }
  0x30   : > { %p656_p7 = pnand %p770_p1, %p769_p0  ;;  %s146_s14 = sshll.u32 %s139_s8, 4  ;;  %s147_s14 = int_to_ptr.vmem [resolvable:$true] %s146_s14 }
  0x31   : > { %s136_s28 = scalar_lea.sflag [#allocation6], %s603_s23  ;;  %s424_s30 = scalar_lea.hbm %s665_s7, 128 }
  0x32   : > { %s771_s29 = scalar_select %p656_p7, 1, 0 }
  0x33   : > { %p425_p11 = scmp.ne.s32.totalorder %s665_s7, %s424_s30  ;;  %s429_s24 = scalar_lea.hbm %s760_s1, 256 }
  0x34   : > { %p430_p2 = scmp.lt.u32.totalorder %s665_s7, %s760_s1  ;;  %p431_p4 = scmp.lt.u32.totalorder %s429_s24, %s424_s30 }
  0x35   : > { %p427_p12 = pnand %p425_p11, %p396_p3  ;;  %p433_p8 = scmp.lt.u32.totalorder %s424_s30, %s665_s7 }
  0x36   : > { %p432_p5 = por %p431_p4, %p430_p2 }
  0x37   : > { %p428_p10 = pneg %p427_p12 }
  0x38   : > { %p434_p9 = por %p433_p8, %p432_p5 }
  0x3a   : > { %p435_p0 = pnand %p434_p9, %p428_p10 }
  0x3c   : > { %438 = shalt.err (!%p435_p0)
}
  0x3d   : > { %s439_s23 = scalar_lea.vmem %s147_s14, 128  ;;  %s527_s25 = smov [#allocation5]  }
  0x3e   : > { %p440_p1 = scmp.ne.s32.totalorder %s147_s14, %s439_s23  ;;  %s444_s26 = sshll.u32 %s527_s25, 4  ;;  %s445_s26 = int_to_ptr.vmem [resolvable:$false] %s444_s26 }
  0x3f   : > { %s446_s27 = scalar_lea.vmem %s445_s26, 256  ;;  %p447_p6 = scmp.lt.s32.totalorder %s147_s14, %s445_s26 }
  0x40   : > { %p442_p11 = pnand %p440_p1, %p396_p3  ;;  %p448_p7 = scmp.lt.s32.totalorder %s446_s27, %s439_s23 }
  0x42   : > { %p443_p12 = pneg %p442_p11  ;;  %p449_p2 = por %p448_p7, %p447_p6 }
  0x44   : > { %p450_p4 = pnand %p449_p2, %p443_p12 }
  0x46   : > { %453 = shalt.err (!%p450_p4)
}
  0x47   : > { %353 = dma.hbm_to_vmem [thread:$0]  (!%p618_p13), %s665_s7, 128, %s147_s14, %s136_s28  }
  0x48   : > { %p772_p10 = scmp.ne.s32.totalorder %s771_s29, 0 }
  0x49   : > { %s692_s5 = sand.u32 (!%p772_p10), 1, %s516_s10   ;;  %p773_p6 = scmp.ne.s32.totalorder (!%p772_p10), %s765_s20, 0 }
  0x4a   : > { %155 = sbr.rel (%p772_p10) target bundleno = 121 (0x79), region = 28  ;;  %s695_s6 = sshll.u32 (!%p772_p10), %s692_s5, 3 }
  0x4b   : > { %s158_s8 = scalar_lea.sflag (!%p772_p10), [#allocation3], %s692_s5  ;;  %s161_s30 = scalar_lea.vmem (!%p772_p10), [#allocation2], %s695_s6 }
  0x51   : > { %499 = dma.done.wait (%p773_p6), %s158_s8, 128  }
  0x52   : > { %501 = vsyncadd (%p773_p6), %s158_s8, 4294967168  ;;  %s167_s3 = scalar_lea.sflag [#allocation6], %s692_s5  ;;  %s170_s29 = scalar_lea.vmem [#allocation5], %s695_s6 }
  0x53   : > { %503 = dma.done.wait (%p773_p6), %s167_s3, 128  }
  0x54   : > { %505 = vsyncadd (%p773_p6), %s167_s3, 4294967168  ;;  %v197_v0 = vld [vmem:[%s161_s30] sm:$0xff]  ;;  %v208_v3 = vlaneseq  ;;  %s336_s7 = sshll.u32 %s565_s13, 3  ;;  %v200_v9 = vld [vmem:[%s170_s29] sm:$0xff]  ;;  %s195_s20 = scalar_lea.vmem [#allocation7], %s695_s6 }
  0x55   : > { %v198_v1 = vmax.f32 %v197_v0, 1e-08  ;;  %v210_v7 = vstv %s336_s7  ;;  %s232_s14 = sshll.u32 %s195_s20, 4  ;;  %s338_s28 = sshll.u32 %s565_s13, 7  ;;  %s712_s14 = int_to_ptr.vmem [resolvable:$true] %s232_s14 }
  0x56   : > { %v209_v5 = vshrl.u32 %v208_v3, 7  ;;  %s717_s24 = scalar_lea.hbm %s761_s2, %s338_s28  ;;  %s219_s17 = scalar_lea.sflag [#allocation4], %s692_s5 }
  0x57   : > { %v199_v2 = vmin.f32 %v198_v1, 1.0  ;;  %s454_s19 = scalar_lea.vmem %s712_s14, 128  ;;  %p774_p3 = scmp.ne.s32.totalorder %s766_s21, 0 }
  0x58   : > { %v211_v10 = vadd.s32 %v210_v7, %v209_v5  ;;  %p455_p13 = scmp.ne.s32.totalorder %s712_s14, %s454_s19  ;;  %s528_s13 = smov [#allocation7]  }
  0x59   : > { %392 = vlog2.f32 %v199_v2  ;;  %v204_v4 = vsub.f32 1.0, %v199_v2  ;;  %s458_s23 = sshll.u32 %s528_s13, 4  ;;  %s459_s23 = int_to_ptr.vmem [resolvable:$false] %s458_s23 }
  0x5a   : > { %vm212_vm0 = vcmp.lt.s32.totalorder %v211_v10, 16  ;;  %p456_p7 = pnand %p455_p13, %p774_p3  ;;  %s460_s25 = scalar_lea.vmem %s459_s23, 256 }
  0x5b   : > { %v205_v6 = vmul.f32 %v204_v4, %v204_v4  ;;  %p461_p8 = scmp.lt.s32.totalorder %s712_s14, %s459_s23  ;;  %p462_p9 = scmp.lt.s32.totalorder %s460_s25, %s454_s19 }
  0x5c   : > { %p457_p5 = pneg %p456_p7 }
  0x5d   : > { %v206_v12 = vsub.f32 0.0, %v205_v6  ;;  %p463_p0 = por %p462_p9, %p461_p8 }
  0x5f   : > { %p464_p1 = pnand %p463_p0, %p457_p5 }
  0x63   : > { %v393_v8 = vpop.eup %392 }
  0x64   : > { %v202_v11 = vmul.f32 0.6931472, %v393_v8 }
  0x66   : > { %v203_v13 = vmul.f32 %v202_v11, %v200_v9 }
  0x68   : > { %v207_v14 = vmul.f32 %v206_v12, %v203_v13 }
  0x6a   : > { %v215_v15 = vsel %vm212_vm0, %v207_v14, 0.0 }
  0x6b   : > { %217 = vst [vmem:[%s195_s20] sm:$0xff] %v215_v15 }
  0x6c   : > { %467 = shalt.err (!%p464_p1)
}
  0x6d   : > { %s468_s26 = scalar_lea.hbm %s717_s24, 128  ;;  %s472_s6 = scalar_lea.hbm %s761_s2, 256 }
  0x6e   : > { %p469_p11 = scmp.ne.s32.totalorder %s717_s24, %s468_s26  ;;  %p473_p4 = scmp.lt.u32.totalorder %s717_s24, %s761_s2 }
  0x6f   : > { %p474_p10 = scmp.lt.u32.totalorder %s472_s6, %s468_s26  ;;  %p476_p13 = scmp.lt.u32.totalorder %s468_s26, %s717_s24 }
  0x70   : > { %p470_p12 = pnand %p469_p11, %p774_p3 }
  0x71   : > { %p475_p6 = por %p474_p10, %p473_p4 }
  0x72   : > { %p471_p2 = pneg %p470_p12 }
  0x73   : > { %p477_p7 = por %p476_p13, %p475_p6 }
  0x75   : > { %p478_p5 = pnand %p477_p7, %p471_p2 }
  0x77   : > { %481 = shalt.err (!%p478_p5)
}
  0x78   : > { %345 = dma.vmem_to_hbm [thread:$0]  (%p774_p3), %s712_s14, 128, %s717_s24, %s219_s17  }
  0x79 PF: > { %s244_s3 = sand.u32 1, %s512_s9   ;;  %p775_p8 = scmp.ne.s32.totalorder %s767_s22, 0 }
  0x7a   : > { %p776_p9 = scmp.ge.s32.totalorder %s524_s12, 2  ;;  %s245_s29 = scalar_lea.sflag [#allocation4], %s244_s3 }
  0x7c   : > { %p355_p0 = pnand %p776_p9, %p775_p8 }
  0x7e   : > { %507 = dma.done.wait (!%p355_p0), %s245_s29, 128  }
  0x7f   : > { %509 = vsyncadd (!%p355_p0), %s245_s29, 4294967168  ;;  %p18_p1 = scmp.ge.s32.totalorder %s569_s15, 4   ;;  %s777_s9 = smov %s516_s10 }
  0x80   : > { %s778_s10 = smov %s520_s11  ;;  %s779_s11 = smov %s581_s18 }
  0x81   : > { %s780_s12 = smov %s569_s15  ;;  %20 = sbr.rel (!%p18_p1) target bundleno = 7 (0x7), region = 86 }
  0x88   :  { %250 = vsyncpa [#allocation3], 1 }
  0x89   :  { %252 = vsyncpa [#allocation3 + $0x1], 1 }
  0x8a   :  { %253 = vsyncpa [#allocation6], 1 }
  0x8b   :  { %255 = vsyncpa [#allocation6 + $0x1], 1 }
  0x8c   :  { %256 = vsyncpa [#allocation4], 1 }
  0x8d   :  { %258 = vsyncpa [#allocation4 + $0x1], 1 }

</bundles_post_ra>
